<compile_context>
chip_gen: v6e
topology: v6e:2x2x1
jax: 0.10.0
libtpu: 0.0.40
codegen_flags: <defaults>
</compile_context>

<pallas_src>
import functools
from typing import List

import jax
import jax.numpy as jnp
from jax.experimental import pallas as pl
from jax.experimental.pallas import tpu as pltpu


def _round_up(v: int, m: int) -> int:
    return ((v + m - 1) // m) * m


def _fused_mlp_kernel(*refs, num_layers: int):
    """refs = (x_ref, w0_ref, b0_ref, w1_ref, b1_ref, ..., o_ref).

    x:   (bn, K0)   f32 batch tile
    w_i: (Ki, Ko)   bf16, pre-transposed to (in, out) -- no in-kernel transpose
    b_i: (1,  Ko)   f32
    o:   (bn, KL)   f32
    The whole MLP runs in one kernel: intermediate activations never leave
    vregs/VMEM.  Matmuls use bf16 operands with f32 accumulation; bias add and
    ReLU run in f32.
    """
    x_ref = refs[0]
    o_ref = refs[-1]
    wb = refs[1:-1]

    h = x_ref[...]                                  # f32
    for i in range(num_layers):
        w = wb[2 * i][...]                          # bf16 (in, out)
        b = wb[2 * i + 1][...]                      # f32  (1, out)
        h = jnp.dot(h.astype(jnp.bfloat16), w,
                    preferred_element_type=jnp.float32) + b
        if i < num_layers - 1:
            h = jnp.maximum(h, 0.0)
    o_ref[...] = h.astype(o_ref.dtype)


def init_qnetwork_params(sizes: List[int], key: jax.Array):
    """torch.nn.Linear-style params: W (out_features, in_features), b (out_features,)."""
    params = []
    for idx in range(1, len(sizes)):
        fan_in, fan_out = sizes[idx - 1], sizes[idx]
        key, kw, kb = jax.random.split(key, 3)
        bound = 1.0 / (fan_in ** 0.5)
        w = jax.random.uniform(kw, (fan_out, fan_in), jnp.float32, -bound, bound)
        b = jax.random.uniform(kb, (fan_out,), jnp.float32, -bound, bound)
        params.append((w, b))
    return params


def prepare_params(params):
    """One-time host-side prep: transpose W -> (in, out) and cast to bf16 (MXU-native,
    halves weight HBM/VMEM bytes).  NO lane padding: full-array blocks satisfy the
    (8,128) rule, so the dominant layer-0 weight transfer is not inflated.
    Biases stay f32 (f32 epilogue)."""
    prepped = []
    for (w, b) in params:
        wt = jnp.asarray(w.T, dtype=jnp.bfloat16)            # (in, out)
        bp = jnp.asarray(b, dtype=jnp.float32).reshape(1, -1)  # (1, out)
        prepped.append((wt, bp))
    return prepped


@functools.partial(jax.jit, static_argnames=("block_n",))
def qnetwork_forward(x: jax.Array, prepped_params, *, block_n: int = 512) -> jax.Array:
    # Flatten like torch.flatten(start_dim=1) -- metadata-only reshape, no pad.
    n = x.shape[0]
    h0 = x.reshape(n, -1)
    k0 = h0.shape[1]
    assert k0 == prepped_params[0][0].shape[0], (k0, prepped_params[0][0].shape)

    # Batch tiling:
    #  * tiny batch (n < 16): one full-dim block (full-array-dim exception).
    #  * otherwise: 8-aligned tile, capped at block_n, and capped at ~n/2 so the
    #    grid exposes >= 2 tiles for the "parallel" axis (v7x megacore).
    #  * grid = cdiv(n, bn); the last partial tile is masked by Pallas (no jnp.pad,
    #    no wasted all-padding grid steps).
    if n >= 16:
        bn = min(block_n, _round_up(pl.cdiv(n, 2), 8))
    else:
        bn = n
    grid = (pl.cdiv(n, bn),)

    num_layers = len(prepped_params)
    out_f = prepped_params[-1][0].shape[1]

    flat_wb = []
    in_specs = [pl.BlockSpec((bn, k0), lambda i: (i, 0))]
    for (wt, bp) in prepped_params:
        flat_wb += [wt, bp]
        # Constant block index -> weights/biases stay VMEM-resident across batch tiles.
        in_specs.append(pl.BlockSpec(wt.shape, lambda i: (0, 0)))
        in_specs.append(pl.BlockSpec(bp.shape, lambda i: (0, 0)))

    return pl.pallas_call(
        functools.partial(_fused_mlp_kernel, num_layers=num_layers),
        out_shape=jax.ShapeDtypeStruct((n, out_f), jnp.float32),
        grid=grid,
        in_specs=in_specs,
        out_specs=pl.BlockSpec((bn, out_f), lambda i: (i, 0)),
        compiler_params=pltpu.CompilerParams(
            dimension_semantics=("parallel",),  # batch tiles shard across v7x's 2 TCs
        ),
    )(h0, *flat_wb)


if __name__ == "__main__":
    key = jax.random.PRNGKey(0)
    key, kx = jax.random.split(key)

    # NCHW input: batch=2, channels=4, 16x16 spatial -> flattened dim = 1024.
    x = jax.random.normal(kx, (2, 4, 16, 16), jnp.float32)

    sizes = [4 * 16 * 16, 32, 16]  # in_features, hidden, n_actions
    params = init_qnetwork_params(sizes, key)
    prepped = prepare_params(params)

    out = jax.block_until_ready(qnetwork_forward(x, prepped))
    assert out.shape == (x.shape[0], sizes[-1]), out.shape

    # Reference A: identical math (bf16 matmul operands, f32 accumulate + epilogue).
    h = x.reshape(x.shape[0], -1)
    for i, (w, b) in enumerate(params):
        h = jnp.dot(h.astype(jnp.bfloat16), w.T.astype(jnp.bfloat16),
                    preferred_element_type=jnp.float32) + b
        if i < len(params) - 1:
            h = jnp.maximum(h, 0.0)
    assert jnp.allclose(out, h, atol=1e-3, rtol=1e-3), float(jnp.max(jnp.abs(out - h)))

    # Reference B: pure-f32 PyTorch semantics; loose tolerance covers the bf16
    # operand cast inside the kernel.
    hf = x.reshape(x.shape[0], -1)
    for i, (w, b) in enumerate(params):
        hf = hf @ w.T + b
        if i < len(params) - 1:
            hf = jnp.maximum(hf, 0.0)
    assert jnp.allclose(out, hf, atol=5e-2, rtol=5e-2), float(jnp.max(jnp.abs(out - hf)))

    print("KERNEL_OK")
</pallas_src>

<mosaic_0001>
module attributes {stable_mosaic.version = 11 : i64} {
  func.func @_fused_mlp_kernel(%arg0: i32, %arg1: memref<2x1024xf32, #tpu.memory_space<vmem>>, %arg2: memref<1024x32xbf16, #tpu.memory_space<vmem>>, %arg3: memref<1x32xf32, #tpu.memory_space<vmem>>, %arg4: memref<32x16xbf16, #tpu.memory_space<vmem>>, %arg5: memref<1x16xf32, #tpu.memory_space<vmem>>, %arg6: memref<2x16xf32, #tpu.memory_space<vmem>>) attributes {dimension_semantics = [#tpu.dimension_semantics<parallel>], iteration_bounds = array<i64: 1>, scalar_prefetch = 0 : i64, scratch_operands = 0 : i64, tpu.core_type = #tpu.core_type<tc>, window_params = [{transform_indices = @transform_0, window_bounds = array<i64: 2, 1024>}, {pipeline_mode = #tpu.pipeline_mode<synchronous>, transform_indices = @transform_1, window_bounds = array<i64: 1024, 32>}, {pipeline_mode = #tpu.pipeline_mode<synchronous>, transform_indices = @transform_2, window_bounds = array<i64: 1, 32>}, {pipeline_mode = #tpu.pipeline_mode<synchronous>, transform_indices = @transform_3, window_bounds = array<i64: 32, 16>}, {pipeline_mode = #tpu.pipeline_mode<synchronous>, transform_indices = @transform_4, window_bounds = array<i64: 1, 16>}, {transform_indices = @transform_5, window_bounds = array<i64: 2, 16>}]} {
    %c0 = arith.constant 0 : index
    %c0_0 = arith.constant 0 : index
    %0 = vector.load %arg1[%c0, %c0_0] : memref<2x1024xf32, #tpu.memory_space<vmem>>, vector<2x1024xf32>
    %c0_1 = arith.constant 0 : index
    %c0_2 = arith.constant 0 : index
    %1 = vector.load %arg2[%c0_1, %c0_2] : memref<1024x32xbf16, #tpu.memory_space<vmem>>, vector<1024x32xbf16>
    %c0_3 = arith.constant 0 : index
    %c0_4 = arith.constant 0 : index
    %2 = vector.load %arg3[%c0_3, %c0_4] : memref<1x32xf32, #tpu.memory_space<vmem>>, vector<1x32xf32>
    %3 = arith.truncf %0 : vector<2x1024xf32> to vector<2x1024xbf16>
    %cst = arith.constant dense<0.000000e+00> : vector<2x32xf32>
    %4 = tpu.matmul %3, %1, %cst {dimension_numbers = #tpu.dot_dimension_numbers<[1], [0], [0], [1], [0, 0, 1, 1], [], []>} : vector<2x1024xbf16>, vector<1024x32xbf16>, vector<2x32xf32> -> vector<2x32xf32>
    %5 = vector.broadcast %2 : vector<1x32xf32> to vector<2x32xf32>
    %6 = arith.addf %4, %5 : vector<2x32xf32>
    %cst_5 = arith.constant 0.000000e+00 : f32
    %7 = vector.broadcast %cst_5 : f32 to vector<2x32xf32>
    %8 = arith.maximumf %6, %7 : vector<2x32xf32>
    %c0_6 = arith.constant 0 : index
    %c0_7 = arith.constant 0 : index
    %9 = vector.load %arg4[%c0_6, %c0_7] : memref<32x16xbf16, #tpu.memory_space<vmem>>, vector<32x16xbf16>
    %c0_8 = arith.constant 0 : index
    %c0_9 = arith.constant 0 : index
    %10 = vector.load %arg5[%c0_8, %c0_9] : memref<1x16xf32, #tpu.memory_space<vmem>>, vector<1x16xf32>
    %11 = arith.truncf %8 : vector<2x32xf32> to vector<2x32xbf16>
    %cst_10 = arith.constant dense<0.000000e+00> : vector<2x16xf32>
    %12 = tpu.matmul %11, %9, %cst_10 {dimension_numbers = #tpu.dot_dimension_numbers<[1], [0], [0], [1], [0, 0, 1, 1], [], []>} : vector<2x32xbf16>, vector<32x16xbf16>, vector<2x16xf32> -> vector<2x16xf32>
    %13 = vector.broadcast %10 : vector<1x16xf32> to vector<2x16xf32>
    %14 = arith.addf %12, %13 : vector<2x16xf32>
    %c0_11 = arith.constant 0 : index
    %c0_12 = arith.constant 0 : index
    %15 = vector.load %arg6[%c0_11, %c0_12] : memref<2x16xf32, #tpu.memory_space<vmem>>, vector<2x16xf32>
    tpu.vector_store %arg6[%c0_11, %c0_12], %14 {strides = array<i32>} : memref<2x16xf32, #tpu.memory_space<vmem>>, vector<2x16xf32>,
    return
  }
  func.func @transform_0(%arg0: i32) -> (i32, i32) {
    %c0_i32 = arith.constant 0 : i32
    %c0_i32_0 = arith.constant 0 : i32
    return %arg0, %c0_i32 : i32, i32
  }
  func.func @transform_1(%arg0: i32) -> (i32, i32) {
    %c0_i32 = arith.constant 0 : i32
    %c0_i32_0 = arith.constant 0 : i32
    %c0_i32_1 = arith.constant 0 : i32
    return %c0_i32, %c0_i32_0 : i32, i32
  }
  func.func @transform_2(%arg0: i32) -> (i32, i32) {
    %c0_i32 = arith.constant 0 : i32
    %c0_i32_0 = arith.constant 0 : i32
    %c0_i32_1 = arith.constant 0 : i32
    return %c0_i32, %c0_i32_0 : i32, i32
  }
  func.func @transform_3(%arg0: i32) -> (i32, i32) {
    %c0_i32 = arith.constant 0 : i32
    %c0_i32_0 = arith.constant 0 : i32
    %c0_i32_1 = arith.constant 0 : i32
    return %c0_i32, %c0_i32_0 : i32, i32
  }
  func.func @transform_4(%arg0: i32) -> (i32, i32) {
    %c0_i32 = arith.constant 0 : i32
    %c0_i32_0 = arith.constant 0 : i32
    %c0_i32_1 = arith.constant 0 : i32
    return %c0_i32, %c0_i32_0 : i32, i32
  }
  func.func @transform_5(%arg0: i32) -> (i32, i32) {
    %c0_i32 = arith.constant 0 : i32
    %c0_i32_0 = arith.constant 0 : i32
    return %arg0, %c0_i32 : i32, i32
  }
}

</mosaic_0001>

<bundles_post_ra>
// kernel: qnetwork_forward.1
= control target key start
LH: loop header
LB: loop body
LE: loop exit
PB: predicated region body
PF: predicated region fallthrough
CT: control target
= control target key end

     0   :  { %v159_v28 = vlaneseq  ;;  %v1102_v36 = vmov 1983009808   ;;  %s1355_s0 = inlined_call_operand.vmem [shape: f32[2,1024], index: 0, kind: input, shape index: {}]   ;;  %s1356_s1 = inlined_call_operand.vmem [shape: bf16[1024,32], index: 1, kind: input, shape index: {}]   ;;  %s1357_s2 = inlined_call_operand.vmem [shape: f32[1,32], index: 2, kind: input, shape index: {}]   ;;  %s1358_s3 = inlined_call_operand.vmem [shape: bf16[32,16], index: 3, kind: input, shape index: {}]   ;;  %s1359_s4 = inlined_call_operand.vmem [shape: f32[1,16], index: 4, kind: input, shape index: {}]   ;;  %s1360_s5 = inlined_call_operand.hbm [shape: f32[2,16], index: 5, kind: output, shape index: {}]  }
   0x1   :  { %v1012_v0 = vld [vmem:[%s1356_s1 + $0x78] sm:$0xff]   ;;  %v1016_v4 = vld [vmem:[%s1356_s1 + $0x70] sm:$0xff]   ;;  %v1020_v8 = vld [vmem:[%s1356_s1 + $0x68] sm:$0xff]   ;;  %v157_v37 = vunpack.c.l.s4 %v1102_v36 }
   0x2   :  { %v1013_v1 = vld [vmem:[%s1356_s1 + $0xf8] sm:$0xff]   ;;  %909 = vmatprep.subr.bf16.mxu0 %v1012_v0  ;;  %v1017_v5 = vld [vmem:[%s1356_s1 + $0xf0] sm:$0xff]   ;;  %v1021_v9 = vld [vmem:[%s1356_s1 + $0xe8] sm:$0xff]   ;;  %v160_v33 = vshrl.u32 %v159_v28, 7 }
   0x3   :  { %v1014_v2 = vld [vmem:[%s1356_s1 + $0x38] sm:$0xff]   ;;  %931 = vmatprep.subr.bf16.mxu1 %v1013_v1  ;;  %v1018_v6 = vld [vmem:[%s1356_s1 + $0x30] sm:$0xff]   ;;  %v1022_v10 = vld [vmem:[%s1356_s1 + $0x28] sm:$0xff]   ;;  %v158_v39 = vunpack.c.0.s8 %v157_v37 }
   0x4   :  { %v1015_v3 = vld [vmem:[%s1356_s1 + $0xb8] sm:$0xff]   ;;  %910 = vmatpush3.bf16.msra.mxu0 %v1014_v2  ;;  %v1019_v7 = vld [vmem:[%s1356_s1 + $0xb0] sm:$0xff]   ;;  %v1023_v11 = vld [vmem:[%s1356_s1 + $0xa8] sm:$0xff]  }
   0x5   :  { %932 = vmatpush3.bf16.msra.mxu1 %v1015_v3  ;;  %911 = vmatprep.subr.bf16.mxu0 %v1016_v4  ;;  %v1024_v12 = vld [vmem:[%s1356_s1 + $0x60] sm:$0xff]   ;;  %v1028_v16 = vld [vmem:[%s1356_s1 + $0x58] sm:$0xff]   ;;  %v1032_v20 = vld [vmem:[%s1356_s1 + $0x50] sm:$0xff]   ;;  %v1241_v41 = vsub.s32 %v158_v39, %v160_v33 }
   0x6   :  { %933 = vmatprep.subr.bf16.mxu1 %v1017_v5  ;;  %v1025_v13 = vld [vmem:[%s1356_s1 + $0xe0] sm:$0xff]   ;;  %v1029_v17 = vld [vmem:[%s1356_s1 + $0xd8] sm:$0xff]   ;;  %v1033_v21 = vld [vmem:[%s1356_s1 + $0xd0] sm:$0xff]  }
   0x7   :  { %v1026_v14 = vld [vmem:[%s1356_s1 + $0x20] sm:$0xff]   ;;  %v1030_v18 = vld [vmem:[%s1356_s1 + $0x18] sm:$0xff]   ;;  %v1034_v22 = vld [vmem:[%s1356_s1 + $0x10] sm:$0xff]  }
   0x8   :  { %912 = vmatpush3.bf16.msra.mxu0 %v1018_v6  ;;  %v1027_v15 = vld [vmem:[%s1356_s1 + $0xa0] sm:$0xff]   ;;  %v1031_v19 = vld [vmem:[%s1356_s1 + $0x98] sm:$0xff]   ;;  %v1035_v23 = vld [vmem:[%s1356_s1 + $0x90] sm:$0xff]  }
   0x9   :  { %934 = vmatpush3.bf16.msra.mxu1 %v1019_v7  ;;  %913 = vmatprep.subr.bf16.mxu0 %v1020_v8  ;;  %v1036_v24 = vld [vmem:[%s1356_s1 + $0x48] sm:$0xff]   ;;  %v1040_v29 = vld [vmem:[%s1356_s1 + $0x40] sm:$0xff]   ;;  %v1045_v35 = vld [vmem:[%s1356_s1 + $0x178] sm:$0xff]  }
   0xa   :  { %935 = vmatprep.subr.bf16.mxu1 %v1021_v9  ;;  %v1037_v25 = vld [vmem:[%s1356_s1 + $0xc8] sm:$0xff]   ;;  %v1041_v30 = vld [vmem:[%s1356_s1 + $0xc0] sm:$0xff]   ;;  %v1046_v38 = vld [vmem:[%s1356_s1 + $0x1f8] sm:$0xff]  }
   0xb   :  { %v1038_v26 = vld [vmem:[%s1356_s1 + $0x8] sm:$0xff]   ;;  %v1042_v31 = vld [vmem:[%s1356_s1] sm:$0xff]   ;;  %v1047_v46 = vld [vmem:[%s1356_s1 + $0x138] sm:$0xff]  }
   0xc   :  { %914 = vmatpush3.bf16.msra.mxu0 %v1022_v10  ;;  %v1039_v27 = vld [vmem:[%s1356_s1 + $0x88] sm:$0xff]   ;;  %v1043_v32 = vld [vmem:[%s1356_s1 + $0x80] sm:$0xff]   ;;  %v1048_v49 = vld [vmem:[%s1356_s1 + $0x1b8] sm:$0xff]  }
   0xd   :  { %936 = vmatpush3.bf16.msra.mxu1 %v1023_v11  ;;  %915 = vmatprep.subr.bf16.mxu0 %v1024_v12  ;;  %v22_v34 = vld [vmem:[%s1355_s0] sm:$0xff]  ;;  %v1049_v52 = vld [vmem:[%s1356_s1 + $0x170] sm:$0xff]   ;;  %v1053_v56 = vld [vmem:[%s1356_s1 + $0x168] sm:$0xff]  }
   0xe   :  { %937 = vmatprep.subr.bf16.mxu1 %v1025_v13  ;;  %v155_v40 = vcombine.high %v22_v34, %v22_v34  ;;  %v162_v42 = vrot.slane %v22_v34, %v1241_v41  ;;  %v1050_v53 = vld [vmem:[%s1356_s1 + $0x1f0] sm:$0xff]   ;;  %v1054_v57 = vld [vmem:[%s1356_s1 + $0x1e8] sm:$0xff]   ;;  %v1057_v60 = vld [vmem:[%s1356_s1 + $0x160] sm:$0xff]  }
   0xf   :  { %v1051_v54 = vld [vmem:[%s1356_s1 + $0x130] sm:$0xff]   ;;  %v1055_v58 = vld [vmem:[%s1356_s1 + $0x128] sm:$0xff]   ;;  %v1058_v61 = vld [vmem:[%s1356_s1 + $0x1e0] sm:$0xff]  }
  0x10   :  { %916 = vmatpush3.bf16.msra.mxu0 %v1026_v14  ;;  %v169_v43 = vrot.slane %v155_v40, %v1241_v41  ;;  %v170_v44 = vcombine.high %v162_v42, %v162_v42  ;;  %v197_v47 = vpack.c.bf16 %v162_v42, %v162_v42  ;;  %v1052_v55 = vld [vmem:[%s1356_s1 + $0x1b0] sm:$0xff]   ;;  %v1056_v59 = vld [vmem:[%s1356_s1 + $0x1a8] sm:$0xff]   ;;  %v1059_v62 = vld [vmem:[%s1356_s1 + $0x120] sm:$0xff]  }
  0x11   :  { %938 = vmatpush3.bf16.msra.mxu1 %v1027_v15  ;;  %917 = vmatprep.subr.bf16.mxu0 %v1028_v16  ;;  %v1060_v63 = vld [vmem:[%s1356_s1 + $0x1a0] sm:$0xff]   ;;  %v1061_v0 = vld [vmem:[%s1356_s1 + $0x158] sm:$0xff]   ;;  %v1065_v4 = vld [vmem:[%s1356_s1 + $0x150] sm:$0xff]  }
  0x12   :  { %939 = vmatprep.subr.bf16.mxu1 %v1029_v17  ;;  %v171_v45 = vcombine.high %v169_v43, %v169_v43  ;;  %v199_v48 = vpack.c.bf16 %v169_v43, %v169_v43  ;;  %v198_v50 = vpack.c.bf16 %v170_v44, %v170_v44  ;;  %v1062_v1 = vld [vmem:[%s1356_s1 + $0x1d8] sm:$0xff]   ;;  %v1066_v5 = vld [vmem:[%s1356_s1 + $0x1d0] sm:$0xff]   ;;  %v1069_v8 = vld [vmem:[%s1356_s1 + $0x148] sm:$0xff]  }
  0x13   :  { %v1063_v2 = vld [vmem:[%s1356_s1 + $0x118] sm:$0xff]   ;;  %v1067_v6 = vld [vmem:[%s1356_s1 + $0x110] sm:$0xff]   ;;  %v1070_v9 = vld [vmem:[%s1356_s1 + $0x1c8] sm:$0xff]  }
  0x14   :  { %918 = vmatpush3.bf16.msra.mxu0 %v1030_v18  ;;  %v200_v51 = vpack.c.bf16 %v171_v45, %v171_v45  ;;  %627 = vmatprep.mubr.bf16.mxu0 %v198_v50  ;;  %v1064_v3 = vld [vmem:[%s1356_s1 + $0x198] sm:$0xff]   ;;  %v1068_v7 = vld [vmem:[%s1356_s1 + $0x190] sm:$0xff]   ;;  %v23_v10 = vld [vmem:[%s1355_s0 + $0x8] sm:$0xff] }
  0x15   :  { %940 = vmatpush3.bf16.msra.mxu1 %v1031_v19  ;;  %919 = vmatprep.subr.bf16.mxu0 %v1032_v20  ;;  %v179_v11 = vrot.slane %v23_v10, %v1241_v41  ;;  %v172_v12 = vcombine.high %v23_v10, %v23_v10 }
  0x16   :  { %941 = vmatprep.subr.bf16.mxu1 %v1033_v21  ;;  %667 = vmatprep.mubr.bf16.mxu1 %v200_v51 }
  0x18   :  { %920 = vmatpush3.bf16.msra.mxu0 %v1034_v22 }
  0x19   :  { %942 = vmatpush3.bf16.msra.mxu1 %v1035_v23  ;;  %921 = vmatprep.subr.bf16.mxu0 %v1036_v24 }
  0x1a   :  { %943 = vmatprep.subr.bf16.mxu1 %v1037_v25 }
  0x1c   :  { %922 = vmatpush3.bf16.msra.mxu0 %v1038_v26 }
  0x1d   :  { %944 = vmatpush3.bf16.msra.mxu1 %v1039_v27  ;;  %923 = vmatprep.subr.bf16.mxu0 %v1040_v29 }
  0x1e   :  { %945 = vmatprep.subr.bf16.mxu1 %v1041_v30 }
  0x20   :  { %924 = vmatpush3.bf16.msra.mxu0 %v1042_v31 }
  0x21   :  { %946 = vmatpush3.bf16.msra.mxu1 %v1043_v32  ;;  %953 = vmatprep.subr.bf16.mxu0 %v1045_v35 }
  0x22   :  { %975 = vmatprep.subr.bf16.mxu1 %v1046_v38 }
  0x23   :  { %628 = vmatmul.mubr.bf16.vlgmr.msra.gmra.mxu0 %v197_v47 }
  0x24   :  { %668 = vmatmul.mubr.bf16.vlgmr.msra.gmra.mxu1 %v199_v48  ;;  %954 = vmatpush3.bf16.msra.mxu0 %v1047_v46 }
  0x25   :  { %976 = vmatpush3.bf16.msra.mxu1 %v1048_v49  ;;  %955 = vmatprep.subr.bf16.mxu0 %v1049_v52 }
  0x26   :  { %977 = vmatprep.subr.bf16.mxu1 %v1050_v53 }
  0x28   :  { %956 = vmatpush3.bf16.msra.mxu0 %v1051_v54 }
  0x29   :  { %978 = vmatpush3.bf16.msra.mxu1 %v1052_v55  ;;  %957 = vmatprep.subr.bf16.mxu0 %v1053_v56 }
  0x2a   :  { %979 = vmatprep.subr.bf16.mxu1 %v1054_v57 }
  0x2c   :  { %958 = vmatpush3.bf16.msra.mxu0 %v1055_v58 }
  0x2d   :  { %980 = vmatpush3.bf16.msra.mxu1 %v1056_v59  ;;  %959 = vmatprep.subr.bf16.mxu0 %v1057_v60 }
  0x2e   :  { %981 = vmatprep.subr.bf16.mxu1 %v1058_v61 }
  0x30   :  { %960 = vmatpush3.bf16.msra.mxu0 %v1059_v62 }
  0x31   :  { %982 = vmatpush3.bf16.msra.mxu1 %v1060_v63  ;;  %961 = vmatprep.subr.bf16.mxu0 %v1061_v0 }
  0x32   :  { %983 = vmatprep.subr.bf16.mxu1 %v1062_v1 }
  0x34   :  { %962 = vmatpush3.bf16.msra.mxu0 %v1063_v2 }
  0x35   :  { %984 = vmatpush3.bf16.msra.mxu1 %v1064_v3  ;;  %963 = vmatprep.subr.bf16.mxu0 %v1065_v4 }
  0x36   :  { %985 = vmatprep.subr.bf16.mxu1 %v1066_v5 }
  0x37   :  { %10 = vsyncpa [#allocation3], 0  ;;  %v1071_v13 = vld [vmem:[%s1356_s1 + $0x108] sm:$0xff]   ;;  %v187_v15 = vcombine.high %v179_v11, %v179_v11  ;;  %v186_v16 = vrot.slane %v172_v12, %v1241_v41  ;;  %v1073_v17 = vld [vmem:[%s1356_s1 + $0x140] sm:$0xff]   ;;  %v201_v24 = vpack.c.bf16 %v179_v11, %v179_v11  ;;  %v1103_v27 = vmov 0.0   ;;  %s1105_s29 = smov [#allocation2]  }
  0x38   :  { %964 = vmatpush3.bf16.msra.mxu0 %v1067_v6  ;;  %v1072_v14 = vld [vmem:[%s1356_s1 + $0x188] sm:$0xff]   ;;  %v1074_v18 = vld [vmem:[%s1356_s1 + $0x1c0] sm:$0xff]   ;;  %vm1104_vm0 = vmmov 0   ;;  %vm780_vm1 = vcmask 261120   ;;  %s832_s30 = sshll.u32 %s1105_s29, 4  ;;  %vm824_vm2 = vcmask 123904   ;;  %s833_s30 = int_to_ptr.vmem [resolvable:$true] %s832_s30 }
  0x39   :  { %986 = vmatpush3.bf16.msra.mxu1 %v1068_v7  ;;  %965 = vmatprep.subr.bf16.mxu0 %v1069_v8  ;;  %v202_v19 = vpack.c.bf16 %v187_v15, %v187_v15  ;;  %v188_v20 = vcombine.high %v186_v16, %v186_v16  ;;  %v1075_v21 = vld [vmem:[%s1356_s1 + $0x100] sm:$0xff]   ;;  %v203_v25 = vpack.c.bf16 %v186_v16, %v186_v16  ;;  %v1078_v26 = vld [vmem:[%s1358_s3 + $0x8] sm:$0xff]   ;;  %s1080_s6 = scalar_lea.vmem %s833_s30, 32  ;;  %p1085_p1 = scmp.lt.s32.totalorder %s833_s30, %s833_s30 }
  0x3a   :  { %987 = vmatprep.subr.bf16.mxu1 %v1070_v9  ;;  %v1076_v22 = vld [vmem:[%s1356_s1 + $0x180] sm:$0xff]   ;;  %p1081_p0 = scmp.ne.s32.totalorder %s833_s30, %s1080_s6  ;;  %p1086_p2 = scmp.lt.s32.totalorder %s1080_s6, %s1080_s6 }
  0x3b   :  { %v204_v23 = vpack.c.bf16 %v188_v20, %v188_v20  ;;  %707 = vmatprep.mubr.bf16.mxu0 %v202_v19  ;;  %v1079_v28 = vld [vmem:[%s1358_s3] sm:$0xff]  }
  0x3c   :  { %966 = vmatpush3.bf16.msra.mxu0 %v1071_v13  ;;  %v840_v38 = vld [vmem:[%s1357_s2] ss:$0 sm:$0xff]  ;;  %p1087_p3 = por %p1086_p2, %p1085_p1 }
  0x3d   :  { %988 = vmatpush3.bf16.msra.mxu1 %v1072_v14  ;;  %967 = vmatprep.subr.bf16.mxu0 %v1073_v17  ;;  %v905_v56 = vld [vmem:[%s1359_s4] ss:$0 sm:$0xff] }
  0x3e   :  { %989 = vmatprep.subr.bf16.mxu1 %v1074_v18  ;;  %747 = vmatprep.mubr.bf16.mxu1 %v204_v23  ;;  %p1088_p4 = pnand %p1087_p3, %p1081_p0 }
  0x40   :  { %968 = vmatpush3.bf16.msra.mxu0 %v1075_v21 }
  0x41   :  { %990 = vmatpush3.bf16.msra.mxu1 %v1076_v22  ;;  %1000 = vmatprep.subr.bf16.mxu0 %v1103_v27 }
  0x43   :  { %708 = vmatmul.mubr.bf16.vlgmr.msra.gmra.mxu0 %v201_v24 }
  0x44   :  { %748 = vmatmul.mubr.bf16.vlgmr.msra.gmra.mxu1 %v203_v25  ;;  %1001 = vmatpush3.bf16.msra.mxu0 %v1078_v26 }
  0x45   :  { %1002 = vmatprep.subr.bf16.mxu0 %v1103_v27  ;;  %1004 = vmatprep.mubr.msk.bf16.mxu0 %vm1104_vm0, %v1103_v27 }
  0x48   :  { %1003 = vmatpush3.bf16.msra.mxu0 %v1079_v28 }
  0xe3   :  { %v925_v29 = vpop.f32.mrf.mxu0 }
  0xe4   :  { %v947_v30 = vpop.f32.mrf.mxu1 }
  0xe5   :  { %v926_v31 = vpop.f32.mrf.mxu0 }
  0xe6   :  { %v948_v32 = vpop.f32.mrf.mxu1  ;;  %v927_v37 = vadd.f32 %v926_v31, %v925_v29 }
  0xe7   :  { %v928_v33 = vpop.f32.mrf.mxu0  ;;  %v949_v40 = vadd.f32 %v948_v32, %v947_v30 }
  0xe8   :  { %v950_v34 = vpop.f32.mrf.mxu1  ;;  %v630_v39 = vadd.f32 %v927_v37, %v840_v38 }
  0xe9   :  { %v929_v35 = vpop.f32.mrf.mxu0 }
  0xea   :  { %v951_v36 = vpop.f32.mrf.mxu1  ;;  %v670_v45 = vadd.f32 %v949_v40, %v630_v39 }
 0x103   :  { %v969_v41 = vpop.f32.mrf.mxu0 }
 0x104   :  { %v991_v42 = vpop.f32.mrf.mxu1 }
 0x105   :  { %v970_v43 = vpop.f32.mrf.mxu0 }
 0x106   :  { %v992_v44 = vpop.f32.mrf.mxu1  ;;  %v971_v46 = vadd.f32 %v970_v43, %v969_v41 }
 0x107   :  { %v972_v47 = vpop.f32.mrf.mxu0  ;;  %v993_v50 = vadd.f32 %v992_v44, %v991_v42 }
 0x108   :  { %v994_v48 = vpop.f32.mrf.mxu1  ;;  %v710_v49 = vadd.f32 %v971_v46, %v670_v45 }
 0x109   :  { %v973_v51 = vpop.f32.mrf.mxu0 }
 0x10a   :  { %v995_v52 = vpop.f32.mrf.mxu1  ;;  %v750_v53 = vadd.f32 %v993_v50, %v710_v49 }
 0x10c   :  { %v755_v54 = vmax.f32 %v750_v53, 0.0 }
 0x10e   :  { %v761_v55 = vpack.c.bf16 %v755_v54, %v755_v54 }
 0x110   :  { %1005 = vmatmul.mubr.msk.bf16.vlgmr.msra.gmra.mxu0 %vm780_vm1, %v761_v55 }
 0x1d0   :  { %v818_v57 = vpop.f32.mrf.mxu0 }
 0x1d1   :  { %v819_v58 = vadd.f32 %v905_v56, %v818_v57 }
 0x1d2   :  { %v1006_v59 = vpop.f32.mrf.mxu0 }
 0x1d3   :  { %825 = vst.msk [vmem:[#allocation2] sm:$0x3] %vm824_vm2, %v819_v58 }
 0x1d4   :  { %v821_v60 = vpop.f32.mrf.mxu0 }
 0x1d5   :  { %1091 = shalt.err (!%p1088_p4)
}
 0x1d6   :  { %835 = dma.vmem_to_hbm [thread:$0]  %s833_s30, 32, %s1360_s5, [#allocation3]   ;;  %v1007_v61 = vpop.f32.mrf.mxu0 }
 0x1d7   :  { %1100 = dma.done.wait [#allocation3], 32  }
 0x1d8   :  { %1101 = vsyncadd [#allocation3], 4294967264 }
 0x1d9   :  { %839 = vsyncpa [#allocation3], 1 }

</bundles_post_ra>
